<compile_context>
chip_gen: v7x
topology: tpu7x:2x2x1
jax: 0.10.0
libtpu: 0.0.40
codegen_flags: <defaults>
</compile_context>

<pallas_src>
import functools

import jax
import jax.numpy as jnp
from jax.experimental import pallas as pl
from jax.experimental.pallas import tpu as pltpu


# ----------------------------------------------------------------------------
# Pallas kernel: one grid step processes `block_b` independent graphs stacked
# into a block-diagonal system.  Everything is 2-D; four MXU passes total.
# ----------------------------------------------------------------------------
def _gcn_classifier_kernel(a_ref, r_ref, x_ref, w1_ref, b1_ref, w2_ref, b2_ref,
                           o_ref, *, tho):
    # --- GCNConv 1 linear (shared weights): one (BN, TD) x (TD, H) pass ------
    xw = jnp.dot(x_ref[...], w1_ref[...],
                 preferred_element_type=jnp.float32)            # (BN, H) f32

    # --- GCNConv 1 propagation: block-diagonal A_hat, bias, ReLU -------------
    h = jnp.dot(a_ref[...], xw.astype(a_ref.dtype),
                preferred_element_type=jnp.float32) + b1_ref[...]
    h = jnp.maximum(h, 0.0)                                     # (BN, H) f32

    # --- GCNConv 2 + node-mean, algebraically folded onto the MXU ------------
    #   mean_n[A_hat @ (H @ W2) + b2] == (colmean(A_hat) @ H) @ W2 + b2
    # R_blk is block-structured so one matvec does all block_b graphs at once.
    rh = jnp.dot(r_ref[...], h.astype(r_ref.dtype),
                 preferred_element_type=jnp.float32)            # (block_b, H)
    m = jnp.dot(rh.astype(w2_ref.dtype), w2_ref[...],
                preferred_element_type=jnp.float32) + b2_ref[...]  # (block_b, OP)

    # --- epilogue (f32): sigmoid + softshrink/sign ----------------------------
    s = jax.nn.sigmoid(m)
    # sigmoid output is strictly > 0, so the s < -tho branch of softshrink is
    # dead and sign(softshrink(s, tho)) * s reduces exactly to where(s>tho, s, 0).
    o_ref[...] = jnp.where(s > tho, s, jnp.zeros_like(s))


# ----------------------------------------------------------------------------
# Per-generation block sizing (review feedback):
#   v5e / v6e : single TensorCore -> fewest grid steps, whole batch per step.
#   v7x       : 2 TensorCores     -> grid multiple of 2 so both cores run.
#   Cap block_b*N at 1024 so a materialized block-diag A stays VMEM-friendly.
# ----------------------------------------------------------------------------
def choose_block_b(batch, num_nodes, device_kind=None):
    if device_kind is None:
        try:
            device_kind = jax.devices()[0].device_kind
        except Exception:  # pragma: no cover
            device_kind = ""
    two_cores = "7" in device_kind                 # TPU7x / v7x
    max_rows = 1024                                # (block_b*N)^2 block-diag cap
    cap = max(8, max_rows // max(num_nodes, 1))
    steps = 2 if (two_cores and batch > 1) else 1
    bb = -(-batch // steps)                        # ceil
    bb = min(bb, cap)
    if bb < batch:
        # multi-step grid: keep sublane dims (8,128)-legal
        bb = -(-bb // 8) * 8
    return max(bb, 1)


# ----------------------------------------------------------------------------
# Wrapper: batched forward. Block-diag adjacency / colmean and expanded+padded
# params are precomputed (cached) — hoisted out of the hot path.
# ----------------------------------------------------------------------------
def gcn_classifier_forward_batched(a_blk, r_blk, x, w1e, b1, w2p, b2p, *,
                                   tho, out_dim, num_nodes):
    """a_blk: (G*BN, BN), r_blk: (G*block_b, BN), x: (B, N, T, D).
    Returns (B, out_dim, 1)."""
    B, N, T, D = x.shape
    assert N == num_nodes
    TD = T * D
    BN = a_blk.shape[1]
    block_b = BN // N
    G = a_blk.shape[0] // BN
    Bp = G * block_b
    H = w1e.shape[1]
    OP = w2p.shape[1]

    # x pre-flattened to (Bp*N, TD): the first matmul consumes the DMA'd tile
    # as-is (no in-kernel reshape / relayout).
    xr = x.reshape(B, N, TD)
    if Bp != B:
        xr = jnp.pad(xr, ((0, Bp - B), (0, 0), (0, 0)))
    xr = xr.reshape(Bp * N, TD).astype(a_blk.dtype)

    kernel = functools.partial(_gcn_classifier_kernel, tho=float(tho))

    cost = pl.CostEstimate(
        flops=int(2 * (Bp * N * TD * H            # x @ W1
                       + G * BN * BN * H          # block-diag A @ xw
                       + G * block_b * BN * H     # R_blk @ h
                       + Bp * H * OP)),           # rh @ W2
        transcendentals=int(Bp * OP),
        bytes_accessed=int(a_blk.nbytes + r_blk.nbytes + xr.nbytes + w1e.nbytes
                           + b1.nbytes + w2p.nbytes + b2p.nbytes + Bp * OP * 4),
    )

    out = pl.pallas_call(
        kernel,
        out_shape=jax.ShapeDtypeStruct((Bp, OP), jnp.float32),
        grid_spec=pltpu.PrefetchScalarGridSpec(
            num_scalar_prefetch=0,
            grid=(G,),
            in_specs=[
                pl.BlockSpec((BN, BN), lambda g: (g, 0)),        # block-diag A_hat
                pl.BlockSpec((block_b, BN), lambda g: (g, 0)),   # block-structured colmean
                pl.BlockSpec((BN, TD), lambda g: (g, 0)),        # x (pre-flattened)
                pl.BlockSpec((TD, H), lambda g: (0, 0)),         # W1 expanded (k-fold)
                pl.BlockSpec((1, H), lambda g: (0, 0)),          # b1
                pl.BlockSpec((H, OP), lambda g: (0, 0)),         # W2, lane-padded
                pl.BlockSpec((1, OP), lambda g: (0, 0)),         # b2, lane-padded
            ],
            out_specs=pl.BlockSpec((block_b, OP), lambda g: (g, 0)),
        ),
        compiler_params=pltpu.CompilerParams(
            dimension_semantics=("parallel",)),
        cost_estimate=cost,
    )(a_blk, r_blk, xr, w1e, b1, w2p, b2p)

    return out[:B, :out_dim][:, :, None]              # (B, out, 1)


# ----------------------------------------------------------------------------
# One-time (cached) graph preparation: dense symmetric-normalized adjacency
# with self loops plus its column mean r = colmean(A_hat).  Scatter-ADD so
# duplicate edges accumulate like PyG's gcn_norm.  All in f32.
# ----------------------------------------------------------------------------
def normalized_adjacency(edge_index, num_nodes):
    src, dst = edge_index[0], edge_index[1]
    adj = jnp.zeros((num_nodes, num_nodes), jnp.float32)
    adj = adj.at[dst, src].add(1.0)                     # message j -> i : A[i, j]
    adj = adj + jnp.eye(num_nodes, dtype=jnp.float32)   # self loops
    deg = adj.sum(axis=1)
    d = jnp.where(deg > 0, jax.lax.rsqrt(deg), 0.0)
    return d[:, None] * adj * d[None, :]


def prepare_graphs(edge_index_batch, num_nodes):
    """edge_index_batch: (B, 2, E). Returns (a_hat (B,N,N), r (B,N)). Cache this."""
    a_hat = jax.vmap(lambda ei: normalized_adjacency(ei, num_nodes))(edge_index_batch)
    r = a_hat.mean(axis=1)                              # per-graph column mean -> (B, N)
    return a_hat, r


def prepare_blocks(a_hat, r, block_b, dtype=jnp.bfloat16):
    """Pad the batch to a multiple of block_b and build the kernel-ready
    block-diagonal adjacency (G*BN, BN) and block-structured colmean
    (G*block_b, BN).  Cache this (depends only on the graphs + block_b)."""
    B, N, _ = a_hat.shape
    Bp = -(-B // block_b) * block_b
    if Bp != B:
        pad = Bp - B
        a_hat = jnp.pad(a_hat, ((0, pad), (0, 0), (0, 0)))
        r = jnp.pad(r, ((0, pad), (0, 0)))
    G = Bp // block_b
    BN = block_b * N
    eye_b = jnp.eye(block_b, dtype=jnp.float32)
    # A_blk[g, (b,i), (c,j)] = a_hat[g*bb+b, i, j] * delta(b, c)
    a_blk = jnp.einsum('gbij,bc->gbicj', a_hat.reshape(G, block_b, N, N), eye_b)
    a_blk = a_blk.reshape(G * BN, BN).astype(dtype)
    # R_blk[g, c, (b,j)] = r[g*bb+b, j] * delta(b, c)
    r_blk = jnp.einsum('gbj,bc->gcbj', r.reshape(G, block_b, N), eye_b)
    r_blk = r_blk.reshape(G * block_b, BN).astype(dtype)
    return a_blk, r_blk


def prepare_params(w1, b1, w2, b2, *, k, dims, dtype=jnp.bfloat16):
    """One-time parameter prep: fold the x[:,:,k] selection into W1 and pad
    W2/b2 to a lane-dense (multiple-of-128) output slab.  Cache this."""
    T, H = w1.shape
    TD = T * dims
    w1e = jnp.zeros((TD, H), jnp.float32).at[jnp.arange(T) * dims + k, :].set(w1)
    O = w2.shape[1]
    OP = -(-O // 128) * 128
    w2p = jnp.zeros((H, OP), jnp.float32).at[:, :O].set(w2)
    b2p = jnp.zeros((1, OP), jnp.float32).at[:, :O].set(b2.reshape(1, O))
    return (w1e.astype(dtype),
            b1.reshape(1, H).astype(jnp.float32),
            w2p.astype(dtype),
            b2p.astype(jnp.float32))


# ----------------------------------------------------------------------------
# Pure-JAX f32 reference with the original (unfolded) op ordering, for validation.
# ----------------------------------------------------------------------------
def reference_forward(a_hat, x, w1, b1, w2, b2, *, k, tho):
    def one(a, xb):
        xk = xb[:, :, k]
        h = jnp.maximum(a @ (xk @ w1) + b1.reshape(1, -1), 0.0)
        h2 = a @ (h @ w2) + b2.reshape(1, -1)
        s = jax.nn.sigmoid(h2.mean(axis=0))
        soft = jnp.where(s > tho, s - tho,
                         jnp.where(s < -tho, s + tho, jnp.zeros_like(s)))
        return (jnp.sign(soft) * s)[:, None]
    return jax.vmap(one)(a_hat, x)


if __name__ == "__main__":
    # ---- hyper-parameters implied by the module's __init__ ------------------
    num_atoms = 16      # N  (args.num_atoms)
    time_stamp = 8      # T  (args.time_stamp)  -> conv1 input dim
    dims = 4            # D  (args.dims)
    k = 2               # args.k
    hidden = 32         # conv1 output dim
    out_dim = 8         # conv2 output dim
    tho = 0.05          # args.tho (softshrink lambda)
    B = 16              # number of independent forwards batched into one call
    num_edges = 48

    key = jax.random.PRNGKey(0)
    kx, ke, kw1, kb1, kw2, kb2 = jax.random.split(key, 6)

    x = jax.random.normal(kx, (B, num_atoms, time_stamp, dims), jnp.float32)
    edge_index = jax.random.randint(ke, (B, 2, num_edges), 0, num_atoms,
                                    dtype=jnp.int32)

    w1 = jax.random.normal(kw1, (time_stamp, hidden), jnp.float32) * 0.1
    b1 = jax.random.normal(kb1, (hidden,), jnp.float32) * 0.1
    w2 = jax.random.normal(kw2, (hidden, out_dim), jnp.float32) * 0.1
    b2 = jax.random.normal(kb2, (out_dim,), jnp.float32) * 0.1

    # Hoisted / cached prep (graph normalization, block-diagonalization and
    # weight expansion stay out of the per-forward hot path).
    block_b = choose_block_b(B, num_atoms)            # per-generation sizing
    a_hat, r = prepare_graphs(edge_index, num_atoms)
    a_blk, r_blk = prepare_blocks(a_hat, r, block_b)  # bf16 MXU inputs
    w1e, b1_2d, w2p, b2p = prepare_params(w1, b1, w2, b2, k=k, dims=dims)

    out = gcn_classifier_forward_batched(a_blk, r_blk, x, w1e, b1_2d, w2p, b2p,
                                         tho=tho, out_dim=out_dim,
                                         num_nodes=num_atoms)
    out = jax.block_until_ready(out)
    assert out.shape == (B, out_dim, 1), out.shape

    ref = reference_forward(a_hat, x, w1, b1, w2, b2, k=k, tho=tho)
    max_err = float(jnp.max(jnp.abs(out - ref)))
    # 5e-3 tolerance: matmul inputs are bf16 (f32 accumulation + f32 epilogue).
    assert jnp.allclose(out, ref, atol=5e-3, rtol=5e-3), max_err

    print("KERNEL_OK")
</pallas_src>

<mosaic_0001>
module attributes {stable_mosaic.version = 11 : i64} {
  func.func @_gcn_classifier_kernel(%arg0: i32, %arg1: memref<256x256xbf16, #tpu.memory_space<vmem>>, %arg2: memref<16x256xbf16, #tpu.memory_space<vmem>>, %arg3: memref<256x32xbf16, #tpu.memory_space<vmem>>, %arg4: memref<32x32xbf16, #tpu.memory_space<vmem>>, %arg5: memref<1x32xf32, #tpu.memory_space<vmem>>, %arg6: memref<32x128xbf16, #tpu.memory_space<vmem>>, %arg7: memref<1x128xf32, #tpu.memory_space<vmem>>, %arg8: memref<16x128xf32, #tpu.memory_space<vmem>>) attributes {dimension_semantics = [#tpu.dimension_semantics<parallel>], iteration_bounds = array<i64: 1>, scalar_prefetch = 0 : i64, scratch_operands = 0 : i64, tpu.core_type = #tpu.core_type<tc>, window_params = [{transform_indices = @transform_0, window_bounds = array<i64: 256, 256>}, {transform_indices = @transform_1, window_bounds = array<i64: 16, 256>}, {transform_indices = @transform_2, window_bounds = array<i64: 256, 32>}, {pipeline_mode = #tpu.pipeline_mode<synchronous>, transform_indices = @transform_3, window_bounds = array<i64: 32, 32>}, {pipeline_mode = #tpu.pipeline_mode<synchronous>, transform_indices = @transform_4, window_bounds = array<i64: 1, 32>}, {pipeline_mode = #tpu.pipeline_mode<synchronous>, transform_indices = @transform_5, window_bounds = array<i64: 32, 128>}, {pipeline_mode = #tpu.pipeline_mode<synchronous>, transform_indices = @transform_6, window_bounds = array<i64: 1, 128>}, {transform_indices = @transform_7, window_bounds = array<i64: 16, 128>}]} {
    %c0 = arith.constant 0 : index
    %c0_0 = arith.constant 0 : index
    %0 = vector.load %arg3[%c0, %c0_0] : memref<256x32xbf16, #tpu.memory_space<vmem>>, vector<256x32xbf16>
    %c0_1 = arith.constant 0 : index
    %c0_2 = arith.constant 0 : index
    %1 = vector.load %arg4[%c0_1, %c0_2] : memref<32x32xbf16, #tpu.memory_space<vmem>>, vector<32x32xbf16>
    %cst = arith.constant dense<0.000000e+00> : vector<256x32xf32>
    %2 = tpu.matmul %0, %1, %cst {dimension_numbers = #tpu.dot_dimension_numbers<[1], [0], [0], [1], [0, 0, 1, 1], [], []>} : vector<256x32xbf16>, vector<32x32xbf16>, vector<256x32xf32> -> vector<256x32xf32>
    %c0_3 = arith.constant 0 : index
    %c0_4 = arith.constant 0 : index
    %3 = vector.load %arg1[%c0_3, %c0_4] : memref<256x256xbf16, #tpu.memory_space<vmem>>, vector<256x256xbf16>
    %4 = arith.truncf %2 : vector<256x32xf32> to vector<256x32xbf16>
    %cst_5 = arith.constant dense<0.000000e+00> : vector<256x32xf32>
    %5 = tpu.matmul %3, %4, %cst_5 {dimension_numbers = #tpu.dot_dimension_numbers<[1], [0], [0], [1], [0, 0, 1, 1], [], []>} : vector<256x256xbf16>, vector<256x32xbf16>, vector<256x32xf32> -> vector<256x32xf32>
    %c0_6 = arith.constant 0 : index
    %c0_7 = arith.constant 0 : index
    %6 = vector.load %arg5[%c0_6, %c0_7] : memref<1x32xf32, #tpu.memory_space<vmem>>, vector<1x32xf32>
    %7 = vector.broadcast %6 : vector<1x32xf32> to vector<256x32xf32>
    %8 = arith.addf %5, %7 : vector<256x32xf32>
    %cst_8 = arith.constant 0.000000e+00 : f32
    %9 = vector.broadcast %cst_8 : f32 to vector<256x32xf32>
    %10 = arith.maximumf %8, %9 : vector<256x32xf32>
    %c0_9 = arith.constant 0 : index
    %c0_10 = arith.constant 0 : index
    %11 = vector.load %arg2[%c0_9, %c0_10] : memref<16x256xbf16, #tpu.memory_space<vmem>>, vector<16x256xbf16>
    %12 = arith.truncf %10 : vector<256x32xf32> to vector<256x32xbf16>
    %cst_11 = arith.constant dense<0.000000e+00> : vector<16x32xf32>
    %13 = tpu.matmul %11, %12, %cst_11 {dimension_numbers = #tpu.dot_dimension_numbers<[1], [0], [0], [1], [0, 0, 1, 1], [], []>} : vector<16x256xbf16>, vector<256x32xbf16>, vector<16x32xf32> -> vector<16x32xf32>
    %14 = arith.truncf %13 : vector<16x32xf32> to vector<16x32xbf16>
    %c0_12 = arith.constant 0 : index
    %c0_13 = arith.constant 0 : index
    %15 = vector.load %arg6[%c0_12, %c0_13] : memref<32x128xbf16, #tpu.memory_space<vmem>>, vector<32x128xbf16>
    %cst_14 = arith.constant dense<0.000000e+00> : vector<16x128xf32>
    %16 = tpu.matmul %14, %15, %cst_14 {dimension_numbers = #tpu.dot_dimension_numbers<[1], [0], [0], [1], [0, 0, 1, 1], [], []>} : vector<16x32xbf16>, vector<32x128xbf16>, vector<16x128xf32> -> vector<16x128xf32>
    %c0_15 = arith.constant 0 : index
    %c0_16 = arith.constant 0 : index
    %17 = vector.load %arg7[%c0_15, %c0_16] : memref<1x128xf32, #tpu.memory_space<vmem>>, vector<1x128xf32>
    %18 = vector.broadcast %17 : vector<1x128xf32> to vector<16x128xf32>
    %19 = arith.addf %16, %18 : vector<16x128xf32>
    %20 = arith.negf %19 : vector<16x128xf32>
    %21 = math.exp %20 : vector<16x128xf32>
    %cst_17 = arith.constant 1.000000e+00 : f32
    %22 = vector.broadcast %cst_17 : f32 to vector<16x128xf32>
    %23 = arith.addf %22, %21 : vector<16x128xf32>
    %24 = arith.divf %22, %23 : vector<16x128xf32>
    %cst_18 = arith.constant 5.000000e-02 : f32
    %25 = vector.broadcast %cst_18 : f32 to vector<16x128xf32>
    %26 = arith.cmpf ogt, %24, %25 : vector<16x128xf32>
    %cst_19 = arith.constant 0.000000e+00 : f32
    %27 = vector.broadcast %cst_19 : f32 to vector<16x128xf32>
    %28 = arith.select %26, %24, %27 : vector<16x128xi1>, vector<16x128xf32>
    %c0_20 = arith.constant 0 : index
    %c0_21 = arith.constant 0 : index
    %29 = vector.load %arg8[%c0_20, %c0_21] : memref<16x128xf32, #tpu.memory_space<vmem>>, vector<16x128xf32>
    tpu.vector_store %arg8[%c0_20, %c0_21], %28 {strides = array<i32>} : memref<16x128xf32, #tpu.memory_space<vmem>>, vector<16x128xf32>,
    return
  }
  func.func @transform_0(%arg0: i32) -> (i32, i32) {
    %c0_i32 = arith.constant 0 : i32
    %c0_i32_0 = arith.constant 0 : i32
    return %arg0, %c0_i32 : i32, i32
  }
  func.func @transform_1(%arg0: i32) -> (i32, i32) {
    %c0_i32 = arith.constant 0 : i32
    %c0_i32_0 = arith.constant 0 : i32
    return %arg0, %c0_i32 : i32, i32
  }
  func.func @transform_2(%arg0: i32) -> (i32, i32) {
    %c0_i32 = arith.constant 0 : i32
    %c0_i32_0 = arith.constant 0 : i32
    return %arg0, %c0_i32 : i32, i32
  }
  func.func @transform_3(%arg0: i32) -> (i32, i32) {
    %c0_i32 = arith.constant 0 : i32
    %c0_i32_0 = arith.constant 0 : i32
    %c0_i32_1 = arith.constant 0 : i32
    return %c0_i32, %c0_i32_0 : i32, i32
  }
  func.func @transform_4(%arg0: i32) -> (i32, i32) {
    %c0_i32 = arith.constant 0 : i32
    %c0_i32_0 = arith.constant 0 : i32
    %c0_i32_1 = arith.constant 0 : i32
    return %c0_i32, %c0_i32_0 : i32, i32
  }
  func.func @transform_5(%arg0: i32) -> (i32, i32) {
    %c0_i32 = arith.constant 0 : i32
    %c0_i32_0 = arith.constant 0 : i32
    %c0_i32_1 = arith.constant 0 : i32
    return %c0_i32, %c0_i32_0 : i32, i32
  }
  func.func @transform_6(%arg0: i32) -> (i32, i32) {
    %c0_i32 = arith.constant 0 : i32
    %c0_i32_0 = arith.constant 0 : i32
    %c0_i32_1 = arith.constant 0 : i32
    return %c0_i32, %c0_i32_0 : i32, i32
  }
  func.func @transform_7(%arg0: i32) -> (i32, i32) {
    %c0_i32 = arith.constant 0 : i32
    %c0_i32_0 = arith.constant 0 : i32
    return %arg0, %c0_i32 : i32, i32
  }
}

</mosaic_0001>

<bundles_post_ra>
// kernel: tpu_custom_call.1
= control target key start
LH: loop header
LB: loop body
LE: loop exit
PB: predicated region body
PF: predicated region fallthrough
CT: control target
= control target key end

     0   :  { %12 = vsyncpa [#allocation3], 0  ;;  %s1600_s0 = inlined_call_operand.hbm [shape: bf16[256,256], index: 0, kind: input, shape index: {}]   ;;  %s1601_s1 = inlined_call_operand.vmem [shape: bf16[16,256], index: 1, kind: input, shape index: {}]   ;;  %s1602_s2 = inlined_call_operand.vmem [shape: bf16[256,32], index: 2, kind: input, shape index: {}]   ;;  %s1603_s3 = inlined_call_operand.vmem [shape: bf16[32,32], index: 3, kind: input, shape index: {}]   ;;  %s1604_s4 = inlined_call_operand.vmem [shape: f32[1,32], index: 4, kind: input, shape index: {}]   ;;  %s1605_s5 = inlined_call_operand.vmem [shape: bf16[32,128], index: 5, kind: input, shape index: {}]   ;;  %s1606_s6 = inlined_call_operand.vmem [shape: f32[1,128], index: 6, kind: input, shape index: {}]   ;;  %s1607_s7 = inlined_call_operand.hbm [shape: f32[16,128], index: 7, kind: output, shape index: {}]  }
   0x1   :  { %13 = vsyncpa [#allocation4], 0  ;;  %s1383_s24 = smov [#allocation2]   ;;  %s1335_s28 = scalar_lea.hbm %s1600_s0, 4096 }
   0x2   :  { %s19_s25 = sshll.u32 %s1383_s24, 4  ;;  %p1336_p0 = scmp.ne.s32.totalorder %s1600_s0, %s1335_s28  ;;  %s20_s25 = int_to_ptr.vmem [resolvable:$true] %s19_s25 }
   0x3   :  { %p1339_p1 = scmp.lt.u32.totalorder %s1335_s28, %s1600_s0 }
   0x5   :  { %p1341_p2 = pnand %p1339_p1, %p1336_p0 }
   0x7   :  { %1344 = shalt.err (!%p1341_p2)
}
   0x8   :  { %s1345_s10 = scalar_lea.vmem %s20_s25, 4096  ;;  %p1350_p4 = scmp.lt.s32.totalorder %s20_s25, %s20_s25 }
   0x9   :  { %p1346_p3 = scmp.ne.s32.totalorder %s20_s25, %s1345_s10  ;;  %p1351_p5 = scmp.lt.s32.totalorder %s1345_s10, %s1345_s10 }
   0xb   :  { %p1352_p6 = por %p1351_p5, %p1350_p4 }
   0xd   :  { %p1353_p7 = pnand %p1352_p6, %p1346_p3 }
   0xf   :  { %1356 = shalt.err (!%p1353_p7)
}
  0x10   :  { %s1384_s11 = smov 128   ;;  %s1385_s12 = smov 8  }
  0x11   :  { %25 = dma.hbm_to_vmem [thread:$0]  %s1600_s0, 4096, %s20_s25, [#allocation3], %s1384_s11, %s1384_s11, %s1385_s12  }
  0x12   :  { %1379 = dma.done.wait [#allocation3], 4096  }
  0x13   :  { %1380 = vsyncadd [#allocation3], 4294963200  ;;  %v1256_v0 = vld [vmem:[%s1603_s3] sm:$0xff]   ;;  %v1257_v1 = vld [vmem:[%s1603_s3 + $0x8] sm:$0xff]   ;;  %vm170_vm0 = vcmask 261120   ;;  %vm1387_vm1 = vmmov 0  }
  0x14   :  { %1190 = vmatprep.subr.bf16.mxu0 %v1256_v0  ;;  %v1258_v2 = vld [vmem:[%s1602_s2] sm:$0xff]   ;;  %v1259_v3 = vld [vmem:[%s1602_s2 + $0x8] sm:$0xff]   ;;  %v1260_v4 = vld [vmem:[%s1602_s2 + $0x10] sm:$0xff]  }
  0x15   :  { %1191 = vmatpush3.bf16.msra.mxu0 %v1256_v0  ;;  %1194 = vmatprep.mubr.msk.bf16.mxu0 %vm170_vm0, %v1258_v2  ;;  %v1261_v5 = vld [vmem:[%s1602_s2 + $0x18] sm:$0xff]   ;;  %v1262_v6 = vld [vmem:[%s1602_s2 + $0x20] sm:$0xff]   ;;  %v1263_v7 = vld [vmem:[%s1602_s2 + $0x28] sm:$0xff]  }
  0x16   :  { %1192 = vmatprep.subr.bf16.mxu0 %v1257_v1  ;;  %v1264_v8 = vld [vmem:[%s1602_s2 + $0x30] sm:$0xff]   ;;  %v1265_v9 = vld [vmem:[%s1602_s2 + $0x38] sm:$0xff]   ;;  %v1266_v10 = vld [vmem:[%s1602_s2 + $0x40] sm:$0xff]  }
  0x17   :  { %v1267_v11 = vld [vmem:[%s1602_s2 + $0x48] sm:$0xff]   ;;  %v1268_v12 = vld [vmem:[%s1602_s2 + $0x50] sm:$0xff]   ;;  %v1269_v13 = vld [vmem:[%s1602_s2 + $0x58] sm:$0xff]  }
  0x18   :  { %v1270_v14 = vld [vmem:[%s1602_s2 + $0x60] sm:$0xff]   ;;  %v1271_v15 = vld [vmem:[%s1602_s2 + $0x68] sm:$0xff]   ;;  %v1272_v16 = vld [vmem:[%s1602_s2 + $0x70] sm:$0xff]  }
  0x19   :  { %1193 = vmatpush3.bf16.msra.mxu0 %v1257_v1  ;;  %v1273_v17 = vld [vmem:[%s1602_s2 + $0x78] sm:$0xff]   ;;  %v1276_v18 = vld [vmem:[#allocation2 + $0x44] ss:$8 sps:$4 sm:$0xff]  }
  0x1a   :  { %659 = vmatprep.mubr.bf16.mxu1 %v1276_v18  ;;  %v1291_v19 = vld [vmem:[#allocation2 + $0x4] ss:$8 sps:$4 sm:$0xff]  }
  0x1b   :  { %v1286_v18 = vld [vmem:[#allocation2 + $0x84] ss:$8 sps:$4 sm:$0xff]  }
  0x1c   :  { %1195 = vmatmul.mubr.msk.bf16.vlgmr.msra.gmra.mrb[0].mxu0 %vm170_vm0, %v1259_v3 }
  0x1d   :  { %1198 = vmatprep.mubr.msk.bf16.mxu0 %vm170_vm0, %v1260_v4  ;;  %v1274_v4 = vld [vmem:[#allocation2 + $0x40] ss:$8 sps:$4 sm:$0xff]  }
  0x24   :  { %1199 = vmatmul.mubr.msk.bf16.gmra.mrb[4].mxu0 %vm170_vm0, %v1261_v5  ;;  %v1289_v5 = vld [vmem:[#allocation2] ss:$8 sps:$4 sm:$0xff]  }
  0x25   :  { %1202 = vmatprep.mubr.msk.bf16.mxu0 %vm170_vm0, %v1262_v6  ;;  %v1277_v6 = vld [vmem:[#allocation2 + $0x54] ss:$8 sps:$4 sm:$0xff]  }
  0x2c   :  { %1203 = vmatmul.mubr.msk.bf16.gmra.mrb[8].mxu0 %vm170_vm0, %v1263_v7  ;;  %v1295_v7 = vld [vmem:[#allocation2 + $0x14] ss:$8 sps:$4 sm:$0xff]  }
  0x2d   :  { %1206 = vmatprep.mubr.msk.bf16.mxu0 %vm170_vm0, %v1264_v8  ;;  %v1279_v8 = vld [vmem:[#allocation2 + $0x50] ss:$8 sps:$4 sm:$0xff]  }
  0x34   :  { %1207 = vmatmul.mubr.msk.bf16.gmra.mrb[12].mxu0 %vm170_vm0, %v1265_v9  ;;  %v1297_v9 = vld [vmem:[#allocation2 + $0x10] ss:$8 sps:$4 sm:$0xff]  }
  0x35   :  { %1210 = vmatprep.mubr.msk.bf16.mxu0 %vm170_vm0, %v1266_v10  ;;  %v1280_v10 = vld [vmem:[#allocation2 + $0x64] ss:$8 sps:$4 sm:$0xff]  }
  0x3c   :  { %1211 = vmatmul.mubr.msk.bf16.gmra.mrb[16].mxu0 %vm170_vm0, %v1267_v11  ;;  %v1301_v11 = vld [vmem:[#allocation2 + $0x24] ss:$8 sps:$4 sm:$0xff]  }
  0x3d   :  { %1214 = vmatprep.mubr.msk.bf16.mxu0 %vm170_vm0, %v1268_v12  ;;  %v1282_v12 = vld [vmem:[#allocation2 + $0x60] ss:$8 sps:$4 sm:$0xff]  }
  0x44   :  { %1215 = vmatmul.mubr.msk.bf16.gmra.mrb[20].mxu0 %vm170_vm0, %v1269_v13  ;;  %v1303_v13 = vld [vmem:[#allocation2 + $0x20] ss:$8 sps:$4 sm:$0xff]  }
  0x45   :  { %1218 = vmatprep.mubr.msk.bf16.mxu0 %vm170_vm0, %v1270_v14  ;;  %v1283_v14 = vld [vmem:[#allocation2 + $0x74] ss:$8 sps:$4 sm:$0xff]  }
  0x4c   :  { %1219 = vmatmul.mubr.msk.bf16.gmra.mrb[24].mxu0 %vm170_vm0, %v1271_v15  ;;  %v1307_v15 = vld [vmem:[#allocation2 + $0x34] ss:$8 sps:$4 sm:$0xff]  }
  0x4d   :  { %1222 = vmatprep.mubr.msk.bf16.mxu0 %vm170_vm0, %v1272_v16  ;;  %v1285_v16 = vld [vmem:[#allocation2 + $0x70] ss:$8 sps:$4 sm:$0xff]  }
  0x54   :  { %1223 = vmatmul.mubr.msk.bf16.gmra.mrb[28].mxu0 %vm170_vm0, %v1273_v17  ;;  %v1309_v17 = vld [vmem:[#allocation2 + $0x30] ss:$8 sps:$4 sm:$0xff]  }
  0x55   :  { %627 = vmatprep.mubr.bf16.mxu0 %v1291_v19  ;;  %v1288_v19 = vld [vmem:[#allocation2 + $0x80] ss:$8 sps:$4 sm:$0xff]  }
  0xef   :  { %v1196_v20 = vpop.f32.mrb[0].mxu0 }
  0xf0   :  { %v253_v21 = vpop.f32.mrb[1].mxu0 }
  0xf1   :  { %v1197_v22 = vpop.f32.mrb[2].mxu0 }
  0xf2   :  { %v413_v23 = vpack.c.bf16 %v1197_v22, %v1196_v20  ;;  %v256_v24 = vpop.f32.mrb[3].mxu0  ;;  %v1292_v20 = vld [vmem:[#allocation2 + $0x94] ss:$8 sps:$4 sm:$0xff]   ;;  %v1298_v22 = vld [vmem:[#allocation2 + $0xa4] ss:$8 sps:$4 sm:$0xff]  }
  0xf3   :  { %v412_v25 = vpack.c.bf16 %v256_v24, %v253_v21  ;;  %v1294_v21 = vld [vmem:[#allocation2 + $0x90] ss:$8 sps:$4 sm:$0xff]   ;;  %v1304_v24 = vld [vmem:[#allocation2 + $0xb4] ss:$8 sps:$4 sm:$0xff]  }
  0xf7   :  { %v1200_v26 = vpop.f32.mrb[4].mxu0 }
  0xf8   :  { %v269_v27 = vpop.f32.mrb[5].mxu0 }
  0xf9   :  { %v1201_v28 = vpop.f32.mrb[6].mxu0 }
  0xfa   :  { %v415_v29 = vpack.c.bf16 %v1201_v28, %v1200_v26  ;;  %v272_v30 = vpop.f32.mrb[7].mxu0  ;;  %v1310_v26 = vld [vmem:[#allocation2 + $0xc4] ss:$8 sps:$4 sm:$0xff]   ;;  %v1313_v28 = vld [vmem:[#allocation2 + $0xd4] ss:$8 sps:$4 sm:$0xff]  }
  0xfb   :  { %v414_v31 = vpack.c.bf16 %v272_v30, %v269_v27  ;;  %v1312_v27 = vld [vmem:[#allocation2 + $0xc0] ss:$8 sps:$4 sm:$0xff]   ;;  %v1316_v30 = vld [vmem:[#allocation2 + $0xe4] ss:$8 sps:$4 sm:$0xff]  }
  0xff   :  { %v1204_v32 = vpop.f32.mrb[8].mxu0 }
 0x100   :  { %v285_v33 = vpop.f32.mrb[9].mxu0 }
 0x101   :  { %v1205_v34 = vpop.f32.mrb[10].mxu0 }
 0x102   :  { %v417_v35 = vpack.c.bf16 %v1205_v34, %v1204_v32  ;;  %v288_v36 = vpop.f32.mrb[11].mxu0  ;;  %v1319_v32 = vld [vmem:[#allocation2 + $0xf4] ss:$8 sps:$4 sm:$0xff]   ;;  %v1324_v34 = vld [vmem:[%s1601_s1 + $0x4] ss:$8 sps:$4 sm:$0xff]  }
 0x103   :  { %v416_v37 = vpack.c.bf16 %v288_v36, %v285_v33  ;;  %v1321_v33 = vld [vmem:[#allocation2 + $0xf0] ss:$8 sps:$4 sm:$0xff]  }
 0x107   :  { %v1208_v38 = vpop.f32.mrb[12].mxu0 }
 0x108   :  { %v301_v39 = vpop.f32.mrb[13].mxu0 }
 0x109   :  { %v1209_v40 = vpop.f32.mrb[14].mxu0 }
 0x10a   :  { %v419_v41 = vpack.c.bf16 %v1209_v40, %v1208_v38  ;;  %v304_v42 = vpop.f32.mrb[15].mxu0 }
 0x10b   :  { %v418_v43 = vpack.c.bf16 %v304_v42, %v301_v39 }
 0x10f   :  { %v1212_v44 = vpop.f32.mrb[16].mxu0 }
 0x110   :  { %v317_v45 = vpop.f32.mrb[17].mxu0 }
 0x111   :  { %v1213_v46 = vpop.f32.mrb[18].mxu0 }
 0x112   :  { %v421_v47 = vpack.c.bf16 %v1213_v46, %v1212_v44  ;;  %v320_v48 = vpop.f32.mrb[19].mxu0 }
 0x113   :  { %v420_v49 = vpack.c.bf16 %v320_v48, %v317_v45 }
 0x115   :  { %1053 = vmatprep.subr.bf16.mxu0 %v420_v49  ;;  %1234 = vmatprep.subr.bf16.mxu1 %v420_v49 }
 0x116   :  { %1054 = vmatpush3.bf16.msra.mxu0 %v412_v25  ;;  %1242 = vmatpush3.bf16.msra.mxu1 %v412_v25  ;;  %v1306_v25 = vld [vmem:[#allocation2 + $0xb0] ss:$8 sps:$4 sm:$0xff]  }
 0x117   :  { %v1216_v50 = vpop.f32.mrb[20].mxu0  ;;  %1055 = vmatprep.subr.bf16.mxu0 %v421_v47  ;;  %1235 = vmatprep.subr.bf16.mxu1 %v421_v47 }
 0x118   :  { %v333_v51 = vpop.f32.mrb[21].mxu0 }
 0x119   :  { %v1217_v52 = vpop.f32.mrb[22].mxu0 }
 0x11a   :  { %v423_v53 = vpack.c.bf16 %v1217_v52, %v1216_v50  ;;  %v336_v54 = vpop.f32.mrb[23].mxu0  ;;  %1056 = vmatpush3.bf16.msra.mxu0 %v413_v23  ;;  %1243 = vmatpush3.bf16.msra.mxu1 %v413_v23  ;;  %v1300_v23 = vld [vmem:[#allocation2 + $0xa0] ss:$8 sps:$4 sm:$0xff]  }
 0x11b   :  { %v422_v55 = vpack.c.bf16 %v336_v54, %v333_v51 }
 0x11d   :  { %1057 = vmatprep.subr.bf16.mxu0 %v422_v55  ;;  %1236 = vmatprep.subr.bf16.mxu1 %v422_v55 }
 0x11e   :  { %1058 = vmatpush3.bf16.msra.mxu0 %v414_v31  ;;  %1244 = vmatpush3.bf16.msra.mxu1 %v414_v31  ;;  %v1318_v31 = vld [vmem:[#allocation2 + $0xe0] ss:$8 sps:$4 sm:$0xff]  }
 0x11f   :  { %v1220_v56 = vpop.f32.mrb[24].mxu0  ;;  %1059 = vmatprep.subr.bf16.mxu0 %v423_v53  ;;  %1237 = vmatprep.subr.bf16.mxu1 %v423_v53 }
 0x120   :  { %v349_v57 = vpop.f32.mrb[25].mxu0 }
 0x121   :  { %v1221_v58 = vpop.f32.mrb[26].mxu0 }
 0x122   :  { %v425_v59 = vpack.c.bf16 %v1221_v58, %v1220_v56  ;;  %v352_v60 = vpop.f32.mrb[27].mxu0  ;;  %1060 = vmatpush3.bf16.msra.mxu0 %v415_v29  ;;  %1245 = vmatpush3.bf16.msra.mxu1 %v415_v29  ;;  %v1315_v29 = vld [vmem:[#allocation2 + $0xd0] ss:$8 sps:$4 sm:$0xff]  }
 0x123   :  { %v424_v61 = vpack.c.bf16 %v352_v60, %v349_v57 }
 0x125   :  { %1061 = vmatprep.subr.bf16.mxu0 %v424_v61  ;;  %1238 = vmatprep.subr.bf16.mxu1 %v424_v61 }
 0x126   :  { %1062 = vmatpush3.bf16.msra.mxu0 %v416_v37  ;;  %1246 = vmatpush3.bf16.msra.mxu1 %v416_v37  ;;  %v1520_v37 = vld [vmem:[%s1604_s4] ss:$0 sm:$0xff] }
 0x127   :  { %v1224_v62 = vpop.f32.mrb[28].mxu0  ;;  %1063 = vmatprep.subr.bf16.mxu0 %v425_v59  ;;  %1239 = vmatprep.subr.bf16.mxu1 %v425_v59 }
 0x128   :  { %v365_v63 = vpop.f32.mrb[29].mxu0 }
 0x129   :  { %v1225_v0 = vpop.f32.mrb[30].mxu0 }
 0x12a   :  { %v427_v1 = vpack.c.bf16 %v1225_v0, %v1224_v62  ;;  %v368_v2 = vpop.f32.mrb[31].mxu0  ;;  %1064 = vmatpush3.bf16.msra.mxu0 %v417_v35  ;;  %1247 = vmatpush3.bf16.msra.mxu1 %v417_v35 }
 0x12b   :  { %v426_v3 = vpack.c.bf16 %v368_v2, %v365_v63 }
 0x12d   :  { %1065 = vmatprep.subr.bf16.mxu0 %v426_v3  ;;  %1240 = vmatprep.subr.bf16.mxu1 %v426_v3 }
 0x12e   :  { %1066 = vmatpush3.bf16.msra.mxu0 %v418_v43  ;;  %1248 = vmatpush3.bf16.msra.mxu1 %v418_v43 }
 0x12f   :  { %1067 = vmatprep.subr.bf16.mxu0 %v427_v1  ;;  %1241 = vmatprep.subr.bf16.mxu1 %v427_v1 }
 0x132   :  { %1068 = vmatpush3.bf16.msra.mxu0 %v419_v41  ;;  %1249 = vmatpush3.bf16.msra.mxu1 %v419_v41 }
 0x135   :  { %660 = vmatmul.mubr.bf16.vlgmr.msra.gmra.mrb[0].mxu1 %v1274_v4  ;;  %628 = vmatmul.mubr.bf16.vlgmr.msra.gmra.mrb[32].mxu0 %v1289_v5 }
 0x136   :  { %667 = vmatprep.mubr.bf16.mxu1 %v1277_v6  ;;  %635 = vmatprep.mubr.bf16.mxu0 %v1295_v7 }
 0x13d   :  { %668 = vmatmul.mubr.bf16.gmra.mrb[4].mxu1 %v1279_v8  ;;  %636 = vmatmul.mubr.bf16.gmra.mrb[36].mxu0 %v1297_v9 }
 0x13e   :  { %675 = vmatprep.mubr.bf16.mxu1 %v1280_v10  ;;  %643 = vmatprep.mubr.bf16.mxu0 %v1301_v11 }
 0x145   :  { %676 = vmatmul.mubr.bf16.gmra.mrb[8].mxu1 %v1282_v12  ;;  %644 = vmatmul.mubr.bf16.gmra.mrb[40].mxu0 %v1303_v13 }
 0x146   :  { %683 = vmatprep.mubr.bf16.mxu1 %v1283_v14  ;;  %651 = vmatprep.mubr.bf16.mxu0 %v1307_v15 }
 0x14d   :  { %684 = vmatmul.mubr.bf16.gmra.mrb[12].mxu1 %v1285_v16  ;;  %652 = vmatmul.mubr.bf16.gmra.mrb[44].mxu0 %v1309_v17 }
 0x14e   :  { %691 = vmatprep.mubr.bf16.mxu1 %v1286_v18  ;;  %848 = vmatprep.mubr.bf16.mxu0 %v1324_v34 }
 0x155   :  { %692 = vmatmul.mubr.bf16.gmra.mrb[16].mxu1 %v1288_v19 }
 0x156   :  { %699 = vmatprep.mubr.bf16.mxu1 %v1292_v20 }
 0x15d   :  { %700 = vmatmul.mubr.bf16.gmra.mrb[20].mxu1 %v1294_v21 }
 0x15e   :  { %707 = vmatprep.mubr.bf16.mxu1 %v1298_v22 }
 0x165   :  { %708 = vmatmul.mubr.bf16.gmra.mrb[24].mxu1 %v1300_v23 }
 0x166   :  { %715 = vmatprep.mubr.bf16.mxu1 %v1304_v24 }
 0x16d   :  { %716 = vmatmul.mubr.bf16.gmra.mrb[28].mxu1 %v1306_v25 }
 0x16e   :  { %723 = vmatprep.mubr.bf16.mxu1 %v1310_v26 }
 0x175   :  { %724 = vmatmul.mubr.bf16.gmra.mrb[32].mxu1 %v1312_v27 }
 0x176   :  { %731 = vmatprep.mubr.bf16.mxu1 %v1313_v28 }
 0x17d   :  { %732 = vmatmul.mubr.bf16.gmra.mrb[36].mxu1 %v1315_v29 }
 0x17e   :  { %739 = vmatprep.mubr.bf16.mxu1 %v1316_v30 }
 0x185   :  { %740 = vmatmul.mubr.bf16.gmra.mrb[40].mxu1 %v1318_v31 }
 0x186   :  { %747 = vmatprep.mubr.bf16.mxu1 %v1319_v32 }
 0x18d   :  { %748 = vmatmul.mubr.bf16.gmra.mrb[44].mxu1 %v1321_v33 }
 0x208   :  { %v1093_v35 = vpop.f32.mrb[0].mxu1  ;;  %v1069_v36 = vpop.f32.mrb[32].mxu0 }
 0x209   :  { %v1094_v38 = vpop.f32.mrb[1].mxu1  ;;  %v1070_v39 = vpop.f32.mrb[33].mxu0 }
 0x20a   :  { %v1095_v40 = vadd.f32 %v1094_v38, %v1093_v35  ;;  %v1096_v41 = vpop.f32.mrb[2].mxu1  ;;  %v1071_v42 = vadd.f32 %v1070_v39, %v1069_v36  ;;  %v1072_v43 = vpop.f32.mrb[34].mxu0 }
 0x20b   :  { %v1097_v44 = vpop.f32.mrb[3].mxu1  ;;  %v1073_v45 = vpop.f32.mrb[35].mxu0 }
 0x20c   :  { %v662_v46 = vadd.f32 %v1095_v40, %v1520_v37  ;;  %v1098_v47 = vadd.f32 %v1097_v44, %v1096_v41  ;;  %v630_v48 = vadd.f32 %v1071_v42, %v1520_v37  ;;  %v1074_v49 = vadd.f32 %v1073_v45, %v1072_v43 }
 0x20e   :  { %v665_v50 = vadd.f32 %v1098_v47, %v1520_v37  ;;  %v756_v51 = vmax.f32 %v630_v48, 0.0  ;;  %v633_v52 = vadd.f32 %v1074_v49, %v1520_v37  ;;  %v764_v53 = vmax.f32 %v662_v46, 0.0 }
 0x210   :  { %v765_v54 = vmax.f32 %v665_v50, 0.0  ;;  %v1099_v55 = vpop.f32.mrb[4].mxu1  ;;  %v757_v56 = vmax.f32 %v633_v52, 0.0  ;;  %v1075_v57 = vpop.f32.mrb[36].mxu0 }
 0x211   :  { %v1100_v58 = vpop.f32.mrb[5].mxu1  ;;  %v1076_v59 = vpop.f32.mrb[37].mxu0 }
 0x212   :  { %v1526_v60 = vpack.c.bf16 %v765_v54, %v764_v53  ;;  %v1101_v61 = vadd.f32 %v1100_v58, %v1099_v55  ;;  %v1102_v62 = vpop.f32.mrb[6].mxu1  ;;  %v1528_v63 = vpack.c.bf16 %v757_v56, %v756_v51  ;;  %v1077_v0 = vadd.f32 %v1076_v59, %v1075_v57  ;;  %v1078_v1 = vpop.f32.mrb[38].mxu0 }
 0x213   :  { %v1103_v2 = vpop.f32.mrb[7].mxu1  ;;  %v1079_v3 = vpop.f32.mrb[39].mxu0 }
 0x214   :  { %v670_v4 = vadd.f32 %v1101_v61, %v1520_v37  ;;  %v1104_v5 = vadd.f32 %v1103_v2, %v1102_v62  ;;  %v638_v6 = vadd.f32 %v1077_v0, %v1520_v37  ;;  %v1080_v7 = vadd.f32 %v1079_v3, %v1078_v1 }
 0x216   :  { %v673_v8 = vadd.f32 %v1104_v5, %v1520_v37  ;;  %v758_v9 = vmax.f32 %v638_v6, 0.0  ;;  %v641_v10 = vadd.f32 %v1080_v7, %v1520_v37  ;;  %v766_v11 = vmax.f32 %v670_v4, 0.0 }
 0x218   :  { %v767_v12 = vmax.f32 %v673_v8, 0.0  ;;  %v1105_v13 = vpop.f32.mrb[8].mxu1  ;;  %v759_v14 = vmax.f32 %v641_v10, 0.0  ;;  %v1081_v15 = vpop.f32.mrb[40].mxu0 }
 0x219   :  { %v1106_v16 = vpop.f32.mrb[9].mxu1  ;;  %v1082_v17 = vpop.f32.mrb[41].mxu0 }
 0x21a   :  { %v1534_v18 = vpack.c.bf16 %v767_v12, %v766_v11  ;;  %v1107_v19 = vadd.f32 %v1106_v16, %v1105_v13  ;;  %v1108_v20 = vpop.f32.mrb[10].mxu1  ;;  %v1536_v21 = vpack.c.bf16 %v759_v14, %v758_v9  ;;  %v1083_v22 = vadd.f32 %v1082_v17, %v1081_v15  ;;  %v1084_v23 = vpop.f32.mrb[42].mxu0 }
 0x21b   :  { %v1109_v24 = vpop.f32.mrb[11].mxu1  ;;  %v1085_v25 = vpop.f32.mrb[43].mxu0 }
 0x21c   :  { %v678_v26 = vadd.f32 %v1107_v19, %v1520_v37  ;;  %v1110_v27 = vadd.f32 %v1109_v24, %v1108_v20  ;;  %v646_v28 = vadd.f32 %v1083_v22, %v1520_v37  ;;  %v1086_v29 = vadd.f32 %v1085_v25, %v1084_v23 }
 0x21e   :  { %v681_v30 = vadd.f32 %v1110_v27, %v1520_v37  ;;  %v760_v31 = vmax.f32 %v646_v28, 0.0  ;;  %v649_v32 = vadd.f32 %v1086_v29, %v1520_v37  ;;  %v768_v33 = vmax.f32 %v678_v26, 0.0 }
 0x220   :  { %v769_v34 = vmax.f32 %v681_v30, 0.0  ;;  %v1111_v35 = vpop.f32.mrb[12].mxu1  ;;  %v761_v36 = vmax.f32 %v649_v32, 0.0  ;;  %v1087_v38 = vpop.f32.mrb[44].mxu0 }
 0x221   :  { %v1112_v39 = vpop.f32.mrb[13].mxu1  ;;  %v1088_v40 = vpop.f32.mrb[45].mxu0 }
 0x222   :  { %v1542_v41 = vpack.c.bf16 %v769_v34, %v768_v33  ;;  %v1113_v42 = vadd.f32 %v1112_v39, %v1111_v35  ;;  %v1114_v43 = vpop.f32.mrb[14].mxu1  ;;  %v792_v44 = vpack.c.bf16 %v761_v36, %v760_v31  ;;  %v1089_v45 = vadd.f32 %v1088_v40, %v1087_v38  ;;  %v1090_v46 = vpop.f32.mrb[46].mxu0 }
 0x223   :  { %v1115_v47 = vpop.f32.mrb[15].mxu1  ;;  %v1091_v48 = vpop.f32.mrb[47].mxu0 }
 0x224   :  { %v686_v49 = vadd.f32 %v1113_v42, %v1520_v37  ;;  %v1116_v50 = vadd.f32 %v1115_v47, %v1114_v43  ;;  %v654_v51 = vadd.f32 %v1089_v45, %v1520_v37  ;;  %v1092_v52 = vadd.f32 %v1091_v48, %v1090_v46 }
 0x226   :  { %v689_v53 = vadd.f32 %v1116_v50, %v1520_v37  ;;  %v762_v54 = vmax.f32 %v654_v51, 0.0  ;;  %v657_v55 = vadd.f32 %v1092_v52, %v1520_v37  ;;  %v770_v56 = vmax.f32 %v686_v49, 0.0 }
 0x228   :  { %v771_v57 = vmax.f32 %v689_v53, 0.0  ;;  %v1117_v58 = vpop.f32.mrb[16].mxu1  ;;  %v763_v59 = vmax.f32 %v657_v55, 0.0 }
 0x229   :  { %v1118_v61 = vpop.f32.mrb[17].mxu1 }
 0x22a   :  { %v1548_v62 = vpack.c.bf16 %v771_v57, %v770_v56  ;;  %v1119_v0 = vadd.f32 %v1118_v61, %v1117_v58  ;;  %v1120_v1 = vpop.f32.mrb[18].mxu1  ;;  %v793_v2 = vpack.c.bf16 %v763_v59, %v762_v54 }
 0x22b   :  { %v1121_v3 = vpop.f32.mrb[19].mxu1 }
 0x22c   :  { %v694_v4 = vadd.f32 %v1119_v0, %v1520_v37  ;;  %v1122_v5 = vadd.f32 %v1121_v3, %v1120_v1 }
 0x22e   :  { %v697_v6 = vadd.f32 %v1122_v5, %v1520_v37  ;;  %v772_v7 = vmax.f32 %v694_v4, 0.0 }
 0x230   :  { %v773_v8 = vmax.f32 %v697_v6, 0.0  ;;  %v1123_v9 = vpop.f32.mrb[20].mxu1 }
 0x231   :  { %v1124_v10 = vpop.f32.mrb[21].mxu1 }
 0x232   :  { %v1125_v11 = vadd.f32 %v1124_v10, %v1123_v9  ;;  %v1126_v12 = vpop.f32.mrb[22].mxu1  ;;  %v798_v13 = vpack.c.bf16 %v773_v8, %v772_v7 }
 0x233   :  { %v1127_v14 = vpop.f32.mrb[23].mxu1 }
 0x234   :  { %v702_v15 = vadd.f32 %v1125_v11, %v1520_v37  ;;  %v1128_v16 = vadd.f32 %v1127_v14, %v1126_v12  ;;  %1165 = vmatprep.subr.bf16.mxu0 %v798_v13 }
 0x235   :  { %1166 = vmatpush3.bf16.msra.mxu0 %v1528_v63 }
 0x236   :  { %v705_v17 = vadd.f32 %v1128_v16, %v1520_v37  ;;  %v774_v19 = vmax.f32 %v702_v15, 0.0 }
 0x238   :  { %v775_v20 = vmax.f32 %v705_v17, 0.0  ;;  %v1129_v22 = vpop.f32.mrb[24].mxu1 }
 0x239   :  { %v1130_v23 = vpop.f32.mrb[25].mxu1 }
 0x23a   :  { %v1131_v24 = vadd.f32 %v1130_v23, %v1129_v22  ;;  %v1132_v25 = vpop.f32.mrb[26].mxu1  ;;  %v799_v26 = vpack.c.bf16 %v775_v20, %v774_v19 }
 0x23b   :  { %v1133_v27 = vpop.f32.mrb[27].mxu1 }
 0x23c   :  { %v710_v28 = vadd.f32 %v1131_v24, %v1520_v37  ;;  %v1134_v29 = vadd.f32 %v1133_v27, %v1132_v25  ;;  %1167 = vmatprep.subr.bf16.mxu0 %v799_v26 }
 0x23d   :  { %1168 = vmatpush3.bf16.msra.mxu0 %v1536_v21 }
 0x23e   :  { %v713_v30 = vadd.f32 %v1134_v29, %v1520_v37  ;;  %v776_v31 = vmax.f32 %v710_v28, 0.0  ;;  %v1322_v28 = vld [vmem:[%s1601_s1] ss:$8 sps:$4 sm:$0xff]  }
 0x23f   :  { %v1325_v29 = vld [vmem:[%s1605_s5] sm:$0xff]  }
 0x240   :  { %v777_v63 = vmax.f32 %v713_v30, 0.0  ;;  %v1135_v32 = vpop.f32.mrb[28].mxu1  ;;  %v1386_v30 = vmov 0.0  }
 0x241   :  { %v1136_v33 = vpop.f32.mrb[29].mxu1 }
 0x242   :  { %v1137_v34 = vadd.f32 %v1136_v33, %v1135_v32  ;;  %v1138_v35 = vpop.f32.mrb[30].mxu1  ;;  %v800_v36 = vpack.c.bf16 %v777_v63, %v776_v31 }
 0x243   :  { %v1139_v38 = vpop.f32.mrb[31].mxu1 }
 0x244   :  { %v718_v39 = vadd.f32 %v1137_v34, %v1520_v37  ;;  %v1140_v40 = vadd.f32 %v1139_v38, %v1138_v35  ;;  %1169 = vmatprep.subr.bf16.mxu0 %v800_v36  ;;  %v1029_v35 = vld [vmem:[%s1606_s6] ss:$0 sm:$0xff] }
 0x245   :  { %1170 = vmatpush3.bf16.msra.mxu0 %v792_v44 }
 0x246   :  { %v721_v42 = vadd.f32 %v1140_v40, %v1520_v37  ;;  %v778_v43 = vmax.f32 %v718_v39, 0.0 }
 0x248   :  { %v779_v45 = vmax.f32 %v721_v42, 0.0  ;;  %v1141_v21 = vpop.f32.mrb[32].mxu1 }
 0x249   :  { %v1142_v46 = vpop.f32.mrb[33].mxu1 }
 0x24a   :  { %v1143_v47 = vadd.f32 %v1142_v46, %v1141_v21  ;;  %v1144_v48 = vpop.f32.mrb[34].mxu1  ;;  %v801_v49 = vpack.c.bf16 %v779_v45, %v778_v43 }
 0x24b   :  { %v1145_v50 = vpop.f32.mrb[35].mxu1 }
 0x24c   :  { %v726_v51 = vadd.f32 %v1143_v47, %v1520_v37  ;;  %v1146_v52 = vadd.f32 %v1145_v50, %v1144_v48  ;;  %1171 = vmatprep.subr.bf16.mxu0 %v801_v49 }
 0x24d   :  { %1172 = vmatpush3.bf16.msra.mxu0 %v793_v2 }
 0x24e   :  { %v729_v53 = vadd.f32 %v1146_v52, %v1520_v37  ;;  %v780_v54 = vmax.f32 %v726_v51, 0.0 }
 0x250   :  { %v781_v55 = vmax.f32 %v729_v53, 0.0  ;;  %v1147_v44 = vpop.f32.mrb[36].mxu1 }
 0x251   :  { %v1148_v56 = vpop.f32.mrb[37].mxu1 }
 0x252   :  { %v1149_v57 = vadd.f32 %v1148_v56, %v1147_v44  ;;  %v1150_v58 = vpop.f32.mrb[38].mxu1  ;;  %v802_v59 = vpack.c.bf16 %v781_v55, %v780_v54 }
 0x253   :  { %v1151_v61 = vpop.f32.mrb[39].mxu1 }
 0x254   :  { %v734_v0 = vadd.f32 %v1149_v57, %v1520_v37  ;;  %v1152_v1 = vadd.f32 %v1151_v61, %v1150_v58  ;;  %1173 = vmatprep.subr.bf16.mxu0 %v802_v59 }
 0x255   :  { %1174 = vmatpush3.bf16.msra.mxu0 %v1526_v60 }
 0x256   :  { %v737_v3 = vadd.f32 %v1152_v1, %v1520_v37  ;;  %v782_v4 = vmax.f32 %v734_v0, 0.0 }
 0x258   :  { %v783_v2 = vmax.f32 %v737_v3, 0.0  ;;  %v1153_v5 = vpop.f32.mrb[40].mxu1 }
 0x259   :  { %v1154_v6 = vpop.f32.mrb[41].mxu1 }
 0x25a   :  { %v1155_v7 = vadd.f32 %v1154_v6, %v1153_v5  ;;  %v1156_v8 = vpop.f32.mrb[42].mxu1  ;;  %v803_v9 = vpack.c.bf16 %v783_v2, %v782_v4 }
 0x25b   :  { %v1157_v10 = vpop.f32.mrb[43].mxu1 }
 0x25c   :  { %v742_v11 = vadd.f32 %v1155_v7, %v1520_v37  ;;  %v1158_v12 = vadd.f32 %v1157_v10, %v1156_v8  ;;  %1175 = vmatprep.subr.bf16.mxu0 %v803_v9 }
 0x25d   :  { %1176 = vmatpush3.bf16.msra.mxu0 %v1534_v18 }
 0x25e   :  { %v745_v13 = vadd.f32 %v1158_v12, %v1520_v37  ;;  %v784_v14 = vmax.f32 %v742_v11, 0.0 }
 0x260   :  { %v785_v60 = vmax.f32 %v745_v13, 0.0  ;;  %v1159_v15 = vpop.f32.mrb[44].mxu1 }
 0x261   :  { %v1160_v16 = vpop.f32.mrb[45].mxu1 }
 0x262   :  { %v1161_v17 = vadd.f32 %v1160_v16, %v1159_v15  ;;  %v1162_v19 = vpop.f32.mrb[46].mxu1  ;;  %v804_v20 = vpack.c.bf16 %v785_v60, %v784_v14 }
 0x263   :  { %v1163_v22 = vpop.f32.mrb[47].mxu1 }
 0x264   :  { %v750_v23 = vadd.f32 %v1161_v17, %v1520_v37  ;;  %v1164_v24 = vadd.f32 %v1163_v22, %v1162_v19  ;;  %1177 = vmatprep.subr.bf16.mxu0 %v804_v20 }
 0x265   :  { %1178 = vmatpush3.bf16.msra.mxu0 %v1542_v41 }
 0x266   :  { %v753_v25 = vadd.f32 %v1164_v24, %v1520_v37  ;;  %v786_v26 = vmax.f32 %v750_v23, 0.0  ;;  %v1326_v37 = vld [vmem:[%s1605_s5 + $0x8] sm:$0xff]   ;;  %s1388_s5 = smov [#allocation5]  }
 0x267   :  { %s948_s14 = sshll.u32 %s1388_s5, 4  ;;  %s949_s14 = int_to_ptr.vmem [resolvable:$true] %s948_s14 }
 0x268   :  { %v787_v18 = vmax.f32 %v753_v25, 0.0  ;;  %s1357_s6 = scalar_lea.vmem %s949_s14, 256  ;;  %p1362_p9 = scmp.lt.s32.totalorder %s949_s14, %s949_s14 }
 0x269   :  { %p1358_p8 = scmp.ne.s32.totalorder %s949_s14, %s1357_s6  ;;  %p1363_p10 = scmp.lt.s32.totalorder %s1357_s6, %s1357_s6 }
 0x26a   :  { %v805_v27 = vpack.c.bf16 %v787_v18, %v786_v26 }
 0x26b   :  { %p1364_p11 = por %p1363_p10, %p1362_p9 }
 0x26c   :  { %1179 = vmatprep.subr.bf16.mxu0 %v805_v27 }
 0x26d   :  { %1180 = vmatpush3.bf16.msra.mxu0 %v1548_v62  ;;  %p1365_p12 = pnand %p1364_p11, %p1358_p8 }
 0x26e   :  { %1226 = vmatprep.subr.bf16.mxu0 %v1386_v30 }
 0x270   :  { %849 = vmatmul.mubr.bf16.vlgmr.msra.gmra.mrb[48].mxu0 %v1322_v28 }
 0x271   :  { %1227 = vmatpush3.bf16.msra.mxu0 %v1325_v29  ;;  %1230 = vmatprep.mubr.msk.bf16.mxu0 %vm1387_vm1, %v1386_v30 }
 0x272   :  { %1228 = vmatprep.subr.bf16.mxu0 %v1386_v30 }
 0x275   :  { %1229 = vmatpush3.bf16.msra.mxu0 %v1326_v37 }
 0x343   :  { %v1181_v41 = vpop.f32.mrb[48].mxu0 }
 0x344   :  { %v1182_v31 = vpop.f32.mrb[49].mxu0 }
 0x345   :  { %v1183_v63 = vadd.f32 %v1182_v31, %v1181_v41  ;;  %v1184_v62 = vpop.f32.mrb[50].mxu0 }
 0x346   :  { %v1185_v32 = vpop.f32.mrb[51].mxu0 }
 0x347   :  { %v1186_v33 = vadd.f32 %v1185_v32, %v1184_v62 }
 0x349   :  { %v857_v34 = vpack.c.bf16 %v1186_v33, %v1183_v63 }
 0x34b   :  { %1231 = vmatmul.mubr.msk.bf16.vlgmr.msra.gmra.mrb[52].mxu0 %vm170_vm0, %v857_v34 }
 0x41e   :  { %v918_v36 = vpop.f32.mrb[52].mxu0 }
 0x41f   :  { %v919_v38 = vadd.f32 %v1029_v35, %v918_v36  ;;  %v1232_v39 = vpop.f32.mrb[53].mxu0 }
 0x420   :  { %v921_v40 = vpop.f32.mrb[54].mxu0 }
 0x421   :  { %v1033_v42 = vmul.f32 -1.442695, %v919_v38  ;;  %v922_v43 = vadd.f32 %v1029_v35, %v921_v40  ;;  %v1233_v45 = vpop.f32.mrb[55].mxu0 }
 0x423   :  { %1327 = vpow2.f32 %v1033_v42  ;;  %v1034_v21 = vmul.f32 -1.442695, %v922_v43 }
 0x425   :  { %1329 = vpow2.f32 %v1034_v21 }
 0x42d   :  { %v1328_v46 = vpop.eup %1327 }
 0x42e   :  { %v931_v47 = vadd.f32 1.0, %v1328_v46 }
 0x42f   :  { %v1330_v48 = vpop.eup %1329 }
 0x430   :  { %1331 = vrcp.f32 %v931_v47  ;;  %v932_v49 = vadd.f32 1.0, %v1330_v48 }
 0x432   :  { %1333 = vrcp.f32 %v932_v49 }
 0x43a   :  { %v1332_v50 = vpop.eup %1331 }
 0x43b   :  { %vm937_vm2 = vcmp.gt.f32.partialorder %v1332_v50, 0.05 }
 0x43c   :  { %v1334_v51 = vpop.eup %1333  ;;  %v939_v52 = vsel %vm937_vm2, %v1332_v50, 0.0 }
 0x43d   :  { %vm938_vm3 = vcmp.gt.f32.partialorder %v1334_v51, 0.05  ;;  %941 = vst [vmem:[#allocation5] sm:$0xff] %v939_v52 }
 0x43e   :  { %v940_v53 = vsel %vm938_vm3, %v1334_v51, 0.0 }
 0x43f   :  { %942 = vst [vmem:[#allocation5 + $0x8] sm:$0xff] %v940_v53 }
 0x440   :  { %1368 = shalt.err (!%p1365_p12)
}
 0x441   :  { %s1369_s17 = scalar_lea.hbm %s1607_s7, 256 }
 0x442   :  { %p1370_p13 = scmp.ne.s32.totalorder %s1607_s7, %s1369_s17  ;;  %p1373_p0 = scmp.lt.u32.totalorder %s1369_s17, %s1607_s7 }
 0x444   :  { %p1375_p1 = pnand %p1373_p0, %p1370_p13 }
 0x446   :  { %1378 = shalt.err (!%p1375_p1)
}
 0x447   :  { %954 = dma.vmem_to_hbm [thread:$0]  %s949_s14, 256, %s1607_s7, [#allocation4], %s1384_s11, %s1384_s11, %s1385_s12  }
 0x448   :  { %1381 = dma.done.wait [#allocation4], 256  }
 0x449   :  { %1382 = vsyncadd [#allocation4], 4294967040 }
 0x44a   :  { %958 = vsyncpa [#allocation3], 1 }
 0x44b   :  { %959 = vsyncpa [#allocation4], 1 }

</bundles_post_ra>
